<compile_context>
chip_gen: v6e
topology: v6e:2x2x1
jax: 0.10.0
libtpu: 0.0.40
codegen_flags: <defaults>
</compile_context>

<pallas_src>
import jax
import jax.numpy as jnp
from jax.experimental import pallas as pl
from jax.experimental.pallas import tpu as pltpu


# ----------------------------------------------------------------------------
# Pallas kernel: whole GIN forward (aggregation + MLPs + ReLU + fused pred
# projection) in one kernel on 128-lane padded, bf16 operands, f32 accumulation.
# ----------------------------------------------------------------------------
def _make_gin_kernel(num_layers: int):
    L = num_layers

    def kernel(x_ref, a_ref, wmlp_ref, wpred_ref, b_ref, out_ref):
        # x_ref:    (N, 128)            bf16  lane-padded node features
        # a_ref:    (N, N)              bf16  A_hat = A + (1+eps)*I  (self term folded in)
        # wmlp_ref: (2L, 128, 128)      bf16  per layer: W1 at 2l, W2 at 2l+1 (zero padded)
        # wpred_ref:((L+1)*128, 128)    bf16  row-concat of all pred weights (zero padded)
        # b_ref:    (2L+1, 128)         f32   rows 2l/2l+1 = mlp_l b1/b2; row 2L = sum of pred biases
        # out_ref:  (N, 128)            f32
        xs = []          # bf16 activations of each GINConv layer
        X = None
        for l in range(L):
            src = x_ref[...] if l == 0 else X
            # GINConv aggregation: A_hat @ X == (1+eps)*X + A @ X
            H = jnp.dot(a_ref[...], src, preferred_element_type=jnp.float32)
            # MLP: Linear -> ReLU -> Linear -> ReLU. Padded lanes stay exactly 0
            # (zero weight rows/cols, zero bias lanes, ReLU(0) == 0).
            H = jnp.maximum(
                jnp.dot(H.astype(jnp.bfloat16), wmlp_ref[2 * l],
                        preferred_element_type=jnp.float32)
                + b_ref[2 * l : 2 * l + 1, :],
                0.0,
            )
            X = jnp.maximum(
                jnp.dot(H.astype(jnp.bfloat16), wmlp_ref[2 * l + 1],
                        preferred_element_type=jnp.float32)
                + b_ref[2 * l + 1 : 2 * l + 2, :],
                0.0,
            ).astype(jnp.bfloat16)
            xs.append(X)

        # All L+1 pred projections fused into ONE K=(L+1)*128 matmul.
        X_cat = jnp.concatenate([x_ref[...]] + xs, axis=-1)
        pred = jnp.dot(X_cat, wpred_ref[...], preferred_element_type=jnp.float32)
        # Single folded pred-bias add; lane-dense (N, 128) store.
        out_ref[...] = pred + b_ref[2 * L : 2 * L + 1, :]

    return kernel


# ----------------------------------------------------------------------------
# One-time parameter packing (kept OUT of the per-call path).
# ----------------------------------------------------------------------------
def pack_gin_params(pred_params, mlp_params, *, eps: float = 0.0, pad_dim: int = 128):
    """Pack GIN parameters into padded bf16 slabs consumed by the kernel.

    pred_params: list of (W, b), W (C_in_or_hid, num_classes), b (1, num_classes).
    mlp_params:  list of (W1, b1, W2, b2) per GINConv layer (weights stored as (fan_in, fan_out)).
    """
    L = len(mlp_params)
    num_classes = pred_params[0][0].shape[1]
    P = pad_dim

    def pad_mat(W):
        out = jnp.zeros((P, P), jnp.float32)
        return out.at[: W.shape[0], : W.shape[1]].set(W.astype(jnp.float32))

    def pad_vec(b):
        b = jnp.asarray(b, jnp.float32).reshape(-1)
        return jnp.zeros((P,), jnp.float32).at[: b.shape[0]].set(b)

    # MLP weight slab: (2L, P, P)
    wmlp = jnp.stack(
        [pad_mat(W) for (W1, _b1, W2, _b2) in mlp_params for W in (W1, W2)], axis=0
    )
    # Pred weights, row-concatenated for the fused K=(L+1)*P projection: ((L+1)*P, P)
    wpred = jnp.concatenate([pad_mat(pred_params[l][0]) for l in range(L + 1)], axis=0)

    # Bias slab (kept f32; added to f32 accumulators): (2L+1, P)
    b_rows = []
    for (_W1, b1, _W2, b2) in mlp_params:
        b_rows += [pad_vec(b1), pad_vec(b2)]
    pred_bias = sum(
        jnp.asarray(pred_params[l][1], jnp.float32).reshape(-1) for l in range(L + 1)
    )
    b_rows.append(pad_vec(pred_bias))
    b_slab = jnp.stack(b_rows, axis=0)

    return {
        "wmlp": wmlp.astype(jnp.bfloat16),
        "wpred": wpred.astype(jnp.bfloat16),
        "b": b_slab,
        "num_layers": L,
        "num_classes": num_classes,
        "pad_dim": P,
        "eps": eps,
    }


def prepare_adjacency(A, *, eps: float = 0.0):
    """Fold the GINConv self term into the adjacency: A_hat = A + (1+eps)*I (bf16, exact for 0/1 A)."""
    N = A.shape[0]
    A_hat = A.astype(jnp.float32) + (1.0 + eps) * jnp.eye(N, dtype=jnp.float32)
    return A_hat.astype(jnp.bfloat16)


# ----------------------------------------------------------------------------
# Per-call wrapper: pad X, launch the fused kernel, slice true classes out.
# ----------------------------------------------------------------------------
def gin_forward_pallas(X, A_hat, packed):
    L = packed["num_layers"]
    P = packed["pad_dim"]
    C = packed["num_classes"]
    N = X.shape[0]

    X_pad = jnp.zeros((N, P), jnp.bfloat16).at[:, : X.shape[1]].set(X.astype(jnp.bfloat16))

    vmem_spec = pl.BlockSpec(memory_space=pltpu.MemorySpace.VMEM)
    out_pad = pl.pallas_call(
        _make_gin_kernel(L),
        out_shape=jax.ShapeDtypeStruct((N, P), jnp.float32),
        in_specs=[vmem_spec] * 5,
        out_specs=vmem_spec,
        # Actual resident operands at N=64 are ~0.4 MiB; 4 MiB leaves ample headroom and
        # stays far below the scoped/physical limits on v5e/v6e/v7x.
        compiler_params=pltpu.CompilerParams(vmem_limit_bytes=4 << 20),
    )(X_pad, A_hat, packed["wmlp"], packed["wpred"], packed["b"])

    return out_pad[:, :C]


# ----------------------------------------------------------------------------
# Pure-JAX references for correctness checking.
# ----------------------------------------------------------------------------
def gin_forward_ref(X, A, pred_params, mlp_params, *, eps: float = 0.0):
    """Full-f32 reference (matches the PyTorch module math exactly)."""
    W0, b0 = pred_params[0]
    pred = X @ W0 + b0
    for l, (W1, b1, W2, b2) in enumerate(mlp_params):
        H = (1.0 + eps) * X + A @ X
        H = jnp.maximum(H @ W1 + b1, 0.0)
        X = jnp.maximum(H @ W2 + b2, 0.0)
        Wp, bp = pred_params[l + 1]
        pred = pred + X @ Wp + bp
    return pred


def gin_forward_ref_bf16(X, A_hat, pred_params, mlp_params):
    """Mirror of the kernel's exact math (bf16 operands, f32 accumulation) for a tight check."""
    bf = jnp.bfloat16

    def f32dot(a, b):
        return jnp.dot(a.astype(bf), b.astype(bf), preferred_element_type=jnp.float32)

    xs = [X.astype(bf)]
    Xc = xs[0]
    for (W1, b1, W2, b2) in mlp_params:
        H = f32dot(A_hat, Xc)
        H = jnp.maximum(f32dot(H, W1) + b1, 0.0)
        Xc = jnp.maximum(f32dot(H, W2) + b2, 0.0).astype(bf)
        xs.append(Xc)
    pred_bias = sum(jnp.asarray(b, jnp.float32).reshape(-1) for (_W, b) in pred_params)
    pred = sum(f32dot(x, pred_params[i][0]) for i, x in enumerate(xs))
    return pred + pred_bias


# ----------------------------------------------------------------------------
# Deterministic parameter construction (nn.Linear-style, stored as (fan_in, fan_out)).
# ----------------------------------------------------------------------------
def _linear_init(key, fan_in, fan_out):
    kw, kb = jax.random.split(key)
    bound = 1.0 / (fan_in ** 0.5)
    W = jax.random.uniform(kw, (fan_in, fan_out), jnp.float32, -bound, bound)
    b = jax.random.uniform(kb, (1, fan_out), jnp.float32, -bound, bound)
    return W, b


def build_gin_params(key, in_channels, hid_channels, num_classes, num_layers):
    keys = jax.random.split(key, (num_layers + 1) + 2 * num_layers)
    ki = iter(range(len(keys)))

    # pred layers: Linear(in, C), then num_layers x Linear(hid, C)
    pred_params = [_linear_init(keys[next(ki)], in_channels, num_classes)]
    for _ in range(num_layers):
        pred_params.append(_linear_init(keys[next(ki)], hid_channels, num_classes))

    # GINConv MLPs: first [in, hid, hid], rest [hid, hid, hid] (num_mlp_layers=2)
    mlp_params = []
    W1, b1 = _linear_init(keys[next(ki)], in_channels, hid_channels)
    W2, b2 = _linear_init(keys[next(ki)], hid_channels, hid_channels)
    mlp_params.append((W1, b1, W2, b2))
    for _ in range(num_layers - 1):
        W1, b1 = _linear_init(keys[next(ki)], hid_channels, hid_channels)
        W2, b2 = _linear_init(keys[next(ki)], hid_channels, hid_channels)
        mlp_params.append((W1, b1, W2, b2))

    return pred_params, mlp_params


if __name__ == "__main__":
    # Small, GIN-consistent shapes.
    N = 64              # number of vertices
    in_channels = 8
    hid_channels = 32
    num_classes = 4
    num_layers = 3      # >= 2 as required by the module
    eps = 0.0           # train_eps=False, use_bn=False, eval mode (no dropout)

    root = jax.random.PRNGKey(0)
    k_x, k_adj, k_params = jax.random.split(root, 3)

    # Node features.
    X = jax.random.normal(k_x, (N, in_channels), jnp.float32)

    # Deterministic random undirected graph -> dense adjacency (no self loops).
    upper = (jax.random.uniform(k_adj, (N, N)) < 0.1).astype(jnp.float32)
    upper = jnp.triu(upper, k=1)
    A = upper + upper.T

    pred_params, mlp_params = build_gin_params(
        k_params, in_channels, hid_channels, num_classes, num_layers
    )

    # One-time packing / graph prep (kept out of the per-call path).
    packed = pack_gin_params(pred_params, mlp_params, eps=eps)
    A_hat = prepare_adjacency(A, eps=eps)

    out = gin_forward_pallas(X, A_hat, packed)
    out = jax.block_until_ready(out)
    assert out.shape == (N, num_classes)

    # Tight check against a pure-JAX mirror of the kernel's exact math (bf16 operands, f32 acc).
    mirror = gin_forward_ref_bf16(X, A_hat, pred_params, mlp_params)
    assert jnp.allclose(out, mirror, atol=2e-3, rtol=2e-3), "Pallas vs bf16 mirror mismatch"

    # Semantic check against the full-f32 reference; tolerance loosened because the kernel
    # intentionally uses bf16 MXU operands (expected precision change, not an error).
    ref = gin_forward_ref(X, A, pred_params, mlp_params, eps=eps)
    assert jnp.allclose(out, ref, atol=1e-1, rtol=5e-2), "Pallas vs f32 reference mismatch"

    print("KERNEL_OK")
</pallas_src>

<mosaic_0001>
module attributes {stable_mosaic.version = 11 : i64} {
  func.func @kernel(%arg0: memref<64x128xbf16, #tpu.memory_space<vmem>>, %arg1: memref<64x64xbf16, #tpu.memory_space<vmem>>, %arg2: memref<6x128x128xbf16, #tpu.memory_space<vmem>>, %arg3: memref<512x128xbf16, #tpu.memory_space<vmem>>, %arg4: memref<7x128xf32, #tpu.memory_space<vmem>>, %arg5: memref<64x128xf32, #tpu.memory_space<vmem>>) attributes {dimension_semantics = [], scalar_prefetch = 0 : i64, scratch_operands = 0 : i64, tpu.core_type = #tpu.core_type<tc>} {
    %c0 = arith.constant 0 : index
    %c0_0 = arith.constant 0 : index
    %0 = vector.load %arg0[%c0, %c0_0] : memref<64x128xbf16, #tpu.memory_space<vmem>>, vector<64x128xbf16>
    %c0_1 = arith.constant 0 : index
    %c0_2 = arith.constant 0 : index
    %1 = vector.load %arg1[%c0_1, %c0_2] : memref<64x64xbf16, #tpu.memory_space<vmem>>, vector<64x64xbf16>
    %cst = arith.constant dense<0.000000e+00> : vector<64x128xf32>
    %2 = tpu.matmul %1, %0, %cst {dimension_numbers = #tpu.dot_dimension_numbers<[1], [0], [0], [1], [0, 0, 1, 1], [], []>} : vector<64x64xbf16>, vector<64x128xbf16>, vector<64x128xf32> -> vector<64x128xf32>
    %3 = arith.truncf %2 : vector<64x128xf32> to vector<64x128xbf16>
    %c0_3 = arith.constant 0 : index
    %c0_4 = arith.constant 0 : index
    %c0_5 = arith.constant 0 : index
    %4 = vector.load %arg2[%c0_3, %c0_4, %c0_5] : memref<6x128x128xbf16, #tpu.memory_space<vmem>>, vector<1x128x128xbf16>
    %5 = vector.shape_cast %4 : vector<1x128x128xbf16> to vector<128x128xbf16>
    %cst_6 = arith.constant dense<0.000000e+00> : vector<64x128xf32>
    %6 = tpu.matmul %3, %5, %cst_6 {dimension_numbers = #tpu.dot_dimension_numbers<[1], [0], [0], [1], [0, 0, 1, 1], [], []>} : vector<64x128xbf16>, vector<128x128xbf16>, vector<64x128xf32> -> vector<64x128xf32>
    %c0_7 = arith.constant 0 : index
    %c0_8 = arith.constant 0 : index
    %7 = vector.load %arg4[%c0_7, %c0_8] : memref<7x128xf32, #tpu.memory_space<vmem>>, vector<1x128xf32>
    %8 = vector.broadcast %7 : vector<1x128xf32> to vector<64x128xf32>
    %9 = arith.addf %6, %8 : vector<64x128xf32>
    %cst_9 = arith.constant 0.000000e+00 : f32
    %10 = vector.broadcast %cst_9 : f32 to vector<64x128xf32>
    %11 = arith.maximumf %9, %10 : vector<64x128xf32>
    %12 = arith.truncf %11 : vector<64x128xf32> to vector<64x128xbf16>
    %c1 = arith.constant 1 : index
    %c0_10 = arith.constant 0 : index
    %c0_11 = arith.constant 0 : index
    %13 = vector.load %arg2[%c1, %c0_10, %c0_11] : memref<6x128x128xbf16, #tpu.memory_space<vmem>>, vector<1x128x128xbf16>
    %14 = vector.shape_cast %13 : vector<1x128x128xbf16> to vector<128x128xbf16>
    %cst_12 = arith.constant dense<0.000000e+00> : vector<64x128xf32>
    %15 = tpu.matmul %12, %14, %cst_12 {dimension_numbers = #tpu.dot_dimension_numbers<[1], [0], [0], [1], [0, 0, 1, 1], [], []>} : vector<64x128xbf16>, vector<128x128xbf16>, vector<64x128xf32> -> vector<64x128xf32>
    %c1_13 = arith.constant 1 : index
    %c0_14 = arith.constant 0 : index
    %16 = vector.load %arg4[%c1_13, %c0_14] : memref<7x128xf32, #tpu.memory_space<vmem>>, vector<1x128xf32>
    %17 = vector.broadcast %16 : vector<1x128xf32> to vector<64x128xf32>
    %18 = arith.addf %15, %17 : vector<64x128xf32>
    %cst_15 = arith.constant 0.000000e+00 : f32
    %19 = vector.broadcast %cst_15 : f32 to vector<64x128xf32>
    %20 = arith.maximumf %18, %19 : vector<64x128xf32>
    %21 = arith.truncf %20 : vector<64x128xf32> to vector<64x128xbf16>
    %c0_16 = arith.constant 0 : index
    %c0_17 = arith.constant 0 : index
    %22 = vector.load %arg1[%c0_16, %c0_17] : memref<64x64xbf16, #tpu.memory_space<vmem>>, vector<64x64xbf16>
    %cst_18 = arith.constant dense<0.000000e+00> : vector<64x128xf32>
    %23 = tpu.matmul %22, %21, %cst_18 {dimension_numbers = #tpu.dot_dimension_numbers<[1], [0], [0], [1], [0, 0, 1, 1], [], []>} : vector<64x64xbf16>, vector<64x128xbf16>, vector<64x128xf32> -> vector<64x128xf32>
    %24 = arith.truncf %23 : vector<64x128xf32> to vector<64x128xbf16>
    %c2 = arith.constant 2 : index
    %c0_19 = arith.constant 0 : index
    %c0_20 = arith.constant 0 : index
    %25 = vector.load %arg2[%c2, %c0_19, %c0_20] : memref<6x128x128xbf16, #tpu.memory_space<vmem>>, vector<1x128x128xbf16>
    %26 = vector.shape_cast %25 : vector<1x128x128xbf16> to vector<128x128xbf16>
    %cst_21 = arith.constant dense<0.000000e+00> : vector<64x128xf32>
    %27 = tpu.matmul %24, %26, %cst_21 {dimension_numbers = #tpu.dot_dimension_numbers<[1], [0], [0], [1], [0, 0, 1, 1], [], []>} : vector<64x128xbf16>, vector<128x128xbf16>, vector<64x128xf32> -> vector<64x128xf32>
    %c2_22 = arith.constant 2 : index
    %c0_23 = arith.constant 0 : index
    %28 = vector.load %arg4[%c2_22, %c0_23] : memref<7x128xf32, #tpu.memory_space<vmem>>, vector<1x128xf32>
    %29 = vector.broadcast %28 : vector<1x128xf32> to vector<64x128xf32>
    %30 = arith.addf %27, %29 : vector<64x128xf32>
    %cst_24 = arith.constant 0.000000e+00 : f32
    %31 = vector.broadcast %cst_24 : f32 to vector<64x128xf32>
    %32 = arith.maximumf %30, %31 : vector<64x128xf32>
    %33 = arith.truncf %32 : vector<64x128xf32> to vector<64x128xbf16>
    %c3 = arith.constant 3 : index
    %c0_25 = arith.constant 0 : index
    %c0_26 = arith.constant 0 : index
    %34 = vector.load %arg2[%c3, %c0_25, %c0_26] : memref<6x128x128xbf16, #tpu.memory_space<vmem>>, vector<1x128x128xbf16>
    %35 = vector.shape_cast %34 : vector<1x128x128xbf16> to vector<128x128xbf16>
    %cst_27 = arith.constant dense<0.000000e+00> : vector<64x128xf32>
    %36 = tpu.matmul %33, %35, %cst_27 {dimension_numbers = #tpu.dot_dimension_numbers<[1], [0], [0], [1], [0, 0, 1, 1], [], []>} : vector<64x128xbf16>, vector<128x128xbf16>, vector<64x128xf32> -> vector<64x128xf32>
    %c3_28 = arith.constant 3 : index
    %c0_29 = arith.constant 0 : index
    %37 = vector.load %arg4[%c3_28, %c0_29] : memref<7x128xf32, #tpu.memory_space<vmem>>, vector<1x128xf32>
    %38 = vector.broadcast %37 : vector<1x128xf32> to vector<64x128xf32>
    %39 = arith.addf %36, %38 : vector<64x128xf32>
    %cst_30 = arith.constant 0.000000e+00 : f32
    %40 = vector.broadcast %cst_30 : f32 to vector<64x128xf32>
    %41 = arith.maximumf %39, %40 : vector<64x128xf32>
    %42 = arith.truncf %41 : vector<64x128xf32> to vector<64x128xbf16>
    %c0_31 = arith.constant 0 : index
    %c0_32 = arith.constant 0 : index
    %43 = vector.load %arg1[%c0_31, %c0_32] : memref<64x64xbf16, #tpu.memory_space<vmem>>, vector<64x64xbf16>
    %cst_33 = arith.constant dense<0.000000e+00> : vector<64x128xf32>
    %44 = tpu.matmul %43, %42, %cst_33 {dimension_numbers = #tpu.dot_dimension_numbers<[1], [0], [0], [1], [0, 0, 1, 1], [], []>} : vector<64x64xbf16>, vector<64x128xbf16>, vector<64x128xf32> -> vector<64x128xf32>
    %45 = arith.truncf %44 : vector<64x128xf32> to vector<64x128xbf16>
    %c4 = arith.constant 4 : index
    %c0_34 = arith.constant 0 : index
    %c0_35 = arith.constant 0 : index
    %46 = vector.load %arg2[%c4, %c0_34, %c0_35] : memref<6x128x128xbf16, #tpu.memory_space<vmem>>, vector<1x128x128xbf16>
    %47 = vector.shape_cast %46 : vector<1x128x128xbf16> to vector<128x128xbf16>
    %cst_36 = arith.constant dense<0.000000e+00> : vector<64x128xf32>
    %48 = tpu.matmul %45, %47, %cst_36 {dimension_numbers = #tpu.dot_dimension_numbers<[1], [0], [0], [1], [0, 0, 1, 1], [], []>} : vector<64x128xbf16>, vector<128x128xbf16>, vector<64x128xf32> -> vector<64x128xf32>
    %c4_37 = arith.constant 4 : index
    %c0_38 = arith.constant 0 : index
    %49 = vector.load %arg4[%c4_37, %c0_38] : memref<7x128xf32, #tpu.memory_space<vmem>>, vector<1x128xf32>
    %50 = vector.broadcast %49 : vector<1x128xf32> to vector<64x128xf32>
    %51 = arith.addf %48, %50 : vector<64x128xf32>
    %cst_39 = arith.constant 0.000000e+00 : f32
    %52 = vector.broadcast %cst_39 : f32 to vector<64x128xf32>
    %53 = arith.maximumf %51, %52 : vector<64x128xf32>
    %54 = arith.truncf %53 : vector<64x128xf32> to vector<64x128xbf16>
    %c5 = arith.constant 5 : index
    %c0_40 = arith.constant 0 : index
    %c0_41 = arith.constant 0 : index
    %55 = vector.load %arg2[%c5, %c0_40, %c0_41] : memref<6x128x128xbf16, #tpu.memory_space<vmem>>, vector<1x128x128xbf16>
    %56 = vector.shape_cast %55 : vector<1x128x128xbf16> to vector<128x128xbf16>
    %cst_42 = arith.constant dense<0.000000e+00> : vector<64x128xf32>
    %57 = tpu.matmul %54, %56, %cst_42 {dimension_numbers = #tpu.dot_dimension_numbers<[1], [0], [0], [1], [0, 0, 1, 1], [], []>} : vector<64x128xbf16>, vector<128x128xbf16>, vector<64x128xf32> -> vector<64x128xf32>
    %c5_43 = arith.constant 5 : index
    %c0_44 = arith.constant 0 : index
    %58 = vector.load %arg4[%c5_43, %c0_44] : memref<7x128xf32, #tpu.memory_space<vmem>>, vector<1x128xf32>
    %59 = vector.broadcast %58 : vector<1x128xf32> to vector<64x128xf32>
    %60 = arith.addf %57, %59 : vector<64x128xf32>
    %cst_45 = arith.constant 0.000000e+00 : f32
    %61 = vector.broadcast %cst_45 : f32 to vector<64x128xf32>
    %62 = arith.maximumf %60, %61 : vector<64x128xf32>
    %63 = arith.truncf %62 : vector<64x128xf32> to vector<64x128xbf16>
    %c0_46 = arith.constant 0 : index
    %c0_47 = arith.constant 0 : index
    %64 = vector.load %arg0[%c0_46, %c0_47] : memref<64x128xbf16, #tpu.memory_space<vmem>>, vector<64x128xbf16>
    %65 = tpu.concatenate %64, %21, %42, %63 in 1 : vector<64x128xbf16>, vector<64x128xbf16>, vector<64x128xbf16>, vector<64x128xbf16> -> vector<64x512xbf16>
    %c0_48 = arith.constant 0 : index
    %c0_49 = arith.constant 0 : index
    %66 = vector.load %arg3[%c0_48, %c0_49] : memref<512x128xbf16, #tpu.memory_space<vmem>>, vector<512x128xbf16>
    %cst_50 = arith.constant dense<0.000000e+00> : vector<64x128xf32>
    %67 = tpu.matmul %65, %66, %cst_50 {dimension_numbers = #tpu.dot_dimension_numbers<[1], [0], [0], [1], [0, 0, 1, 1], [], []>} : vector<64x512xbf16>, vector<512x128xbf16>, vector<64x128xf32> -> vector<64x128xf32>
    %c6 = arith.constant 6 : index
    %c0_51 = arith.constant 0 : index
    %68 = vector.load %arg4[%c6, %c0_51] : memref<7x128xf32, #tpu.memory_space<vmem>>, vector<1x128xf32>
    %69 = vector.broadcast %68 : vector<1x128xf32> to vector<64x128xf32>
    %70 = arith.addf %67, %69 : vector<64x128xf32>
    %c0_52 = arith.constant 0 : index
    %c0_53 = arith.constant 0 : index
    %71 = vector.load %arg5[%c0_52, %c0_53] : memref<64x128xf32, #tpu.memory_space<vmem>>, vector<64x128xf32>
    tpu.vector_store %arg5[%c0_52, %c0_53], %70 {strides = array<i32>} : memref<64x128xf32, #tpu.memory_space<vmem>>, vector<64x128xf32>,
    return
  }
}

</mosaic_0001>

<bundles_post_ra>
// kernel: tpu_custom_call.1
= control target key start
LH: loop header
LB: loop body
LE: loop exit
PB: predicated region body
PF: predicated region fallthrough
CT: control target
= control target key end

     0   :  { %10 = vsyncpa [#allocation3], 0  ;;  %s2530_s0 = inlined_call_operand.hbm [shape: bf16[64,128], index: 0, kind: input, shape index: {}]   ;;  %s2531_s1 = inlined_call_operand.hbm [shape: bf16[64,64], index: 1, kind: input, shape index: {}]   ;;  %s2532_s2 = inlined_call_operand.hbm [shape: bf16[6,128,128], index: 2, kind: input, shape index: {}]   ;;  %s2533_s3 = inlined_call_operand.hbm [shape: bf16[512,128], index: 3, kind: input, shape index: {}]   ;;  %s2534_s4 = inlined_call_operand.hbm [shape: f32[7,128], index: 4, kind: input, shape index: {}]   ;;  %s2535_s5 = inlined_call_operand.hbm [shape: f32[64,128], index: 5, kind: output, shape index: {}]  }
   0x1   :  { %11 = vsyncpa [#allocation6], 0 }
   0x2   :  { %12 = vsyncpa [#allocation9], 0 }
   0x3   :  { %13 = vsyncpa [#allocation4], 0  ;;  %s2388_s18 = smov [#allocation5]   ;;  %s2389_s20 = smov [#allocation8]  }
   0x4   :  { %s31_s19 = sshll.u32 %s2388_s18, 4  ;;  %s55_s21 = sshll.u32 %s2389_s20, 4  ;;  %s32_s19 = int_to_ptr.vmem [resolvable:$true] %s31_s19  ;;  %s56_s21 = int_to_ptr.vmem [resolvable:$true] %s55_s21 }
   0x5   :  { %s2268_s22 = scalar_lea.vmem %s32_s19, 512  ;;  %p2273_p1 = scmp.lt.s32.totalorder %s32_s19, %s32_s19 }
   0x6   :  { %p2269_p0 = scmp.ne.s32.totalorder %s32_s19, %s2268_s22  ;;  %p2274_p2 = scmp.lt.s32.totalorder %s2268_s22, %s2268_s22 }
   0x8   :  { %p2275_p3 = por %p2274_p2, %p2273_p1 }
   0xa   :  { %p2276_p4 = pnand %p2275_p3, %p2269_p0 }
   0xc   :  { %2279 = shalt.err (!%p2276_p4)
}
   0xd   :  { %s2390_s23 = smov 64   ;;  %s2391_s24 = smov 4  }
   0xe   :  { %37 = dma.hbm_to_vmem [thread:$0]  %s2531_s1, 512, %s32_s19, [#allocation6], %s2390_s23, %s2390_s23, %s2391_s24  }
   0xf   :  { %s2288_s27 = scalar_lea.vmem %s56_s21, 4096  ;;  %p2293_p6 = scmp.lt.s32.totalorder %s56_s21, %s56_s21 }
  0x10   :  { %p2289_p5 = scmp.ne.s32.totalorder %s56_s21, %s2288_s27  ;;  %p2294_p7 = scmp.lt.s32.totalorder %s2288_s27, %s2288_s27 }
  0x12   :  { %p2295_p8 = por %p2294_p7, %p2293_p6 }
  0x14   :  { %p2296_p9 = pnand %p2295_p8, %p2289_p5 }
  0x16   :  { %2299 = shalt.err (!%p2296_p9)
}
  0x17   :  { %61 = dma.hbm_to_vmem [thread:$0]  %s2533_s3, 4096, %s56_s21, [#allocation9], %s2390_s23, %s2390_s23, %s2391_s24  }
  0x18   :  { %s2392_s30 = smov [#allocation2]   ;;  %s2393_s7 = smov [#allocation7]  }
  0x19   :  { %s19_s6 = sshll.u32 %s2392_s30, 4  ;;  %s43_s8 = sshll.u32 %s2393_s7, 4  ;;  %s20_s6 = int_to_ptr.vmem [resolvable:$true] %s19_s6  ;;  %s44_s8 = int_to_ptr.vmem [resolvable:$true] %s43_s8 }
  0x1a   :  { %s2308_s1 = scalar_lea.vmem %s20_s6, 512  ;;  %p2313_p11 = scmp.lt.s32.totalorder %s20_s6, %s20_s6 }
  0x1b   :  { %p2309_p10 = scmp.ne.s32.totalorder %s20_s6, %s2308_s1  ;;  %p2314_p12 = scmp.lt.s32.totalorder %s2308_s1, %s2308_s1 }
  0x1d   :  { %p2315_p13 = por %p2314_p12, %p2313_p11 }
  0x1f   :  { %p2316_p0 = pnand %p2315_p13, %p2309_p10 }
  0x21   :  { %2319 = shalt.err (!%p2316_p0)
}
  0x22   :  { %25 = dma.hbm_to_vmem [thread:$0]  %s2530_s0, 512, %s20_s6, [#allocation3], %s2390_s23, %s2390_s23, %s2391_s24  }
  0x23   :  { %s2328_s3 = scalar_lea.vmem %s44_s8, 6144  ;;  %p2333_p2 = scmp.lt.s32.totalorder %s44_s8, %s44_s8 }
  0x24   :  { %p2329_p1 = scmp.ne.s32.totalorder %s44_s8, %s2328_s3  ;;  %p2334_p3 = scmp.lt.s32.totalorder %s2328_s3, %s2328_s3 }
  0x26   :  { %p2335_p4 = por %p2334_p3, %p2333_p2 }
  0x28   :  { %p2336_p5 = pnand %p2335_p4, %p2329_p1 }
  0x2a   :  { %2339 = shalt.err (!%p2336_p5)
}
  0x2b   :  { %49 = dma.hbm_to_vmem [thread:$0]  %s2532_s2, 6144, %s44_s8, [#allocation6], %s2390_s23, %s2390_s23, %s2391_s24  }
  0x2c   :  { %s2394_s13 = smov [#allocation10]  }
  0x2d   :  { %s68_s14 = sshll.u32 %s2394_s13, 4  ;;  %s69_s14 = int_to_ptr.vmem [resolvable:$true] %s68_s14 }
  0x2e   :  { %s2348_s15 = scalar_lea.vmem %s69_s14, 128  ;;  %p2353_p7 = scmp.lt.s32.totalorder %s69_s14, %s69_s14 }
  0x2f   :  { %p2349_p6 = scmp.ne.s32.totalorder %s69_s14, %s2348_s15  ;;  %p2354_p8 = scmp.lt.s32.totalorder %s2348_s15, %s2348_s15 }
  0x31   :  { %p2355_p9 = por %p2354_p8, %p2353_p7 }
  0x33   :  { %p2356_p10 = pnand %p2355_p9, %p2349_p6 }
  0x35   :  { %2359 = shalt.err (!%p2356_p10)
}
  0x36   :  { %71 = dma.hbm_to_vmem [thread:$0]  %s2534_s4, 128, %s69_s14, [#allocation9]  }
  0x37   :  { %2380 = dma.done.wait [#allocation3], 512  }
  0x38   :  { %2381 = vsyncadd [#allocation3], 4294966784 }
  0x39   :  { %2382 = dma.done.wait [#allocation6], 6656  }
  0x3a   :  { %2383 = vsyncadd [#allocation6], 4294960640 }
  0x3b   :  { %2384 = dma.done.wait [#allocation9], 4224  }
  0x3c   :  { %2385 = vsyncadd [#allocation9], 4294963072  ;;  %v2168_v0 = vld [vmem:[#allocation2 + $0x18] sm:$0xff]   ;;  %v2169_v1 = vld [vmem:[#allocation2 + $0x10] sm:$0xff]   ;;  %vm148_vm0 = vcmask 523264   ;;  %s2395_s2 = smov [#allocation11]  }
  0x3d   :  { %1950 = vmatprep.subr.bf16.mxu0 %v2168_v0  ;;  %v2170_v2 = vld [vmem:[#allocation2 + $0x8] sm:$0xff]   ;;  %v2455_v3 = vld [vmem:[#allocation5] sm:$0xff]   ;;  %v2176_v5 = vld [vmem:[#allocation7 + $0x38] sm:$0xff]   ;;  %s1653_s4 = sshll.u32 %s2395_s2, 4  ;;  %s1654_s4 = int_to_ptr.vmem [resolvable:$true] %s1653_s4 }
  0x3e   :  { %1951 = vmatpush3.bf16.msra.mxu0 %v2168_v0  ;;  %1958 = vmatprep.mubr.msk.bf16.mxu0 %vm148_vm0, %v2455_v3  ;;  %v2171_v4 = vld [vmem:[#allocation2] sm:$0xff]   ;;  %v2177_v6 = vld [vmem:[#allocation7 + $0x30] sm:$0xff]   ;;  %v2459_v7 = vld [vmem:[#allocation5 + $0x8] sm:$0xff]   ;;  %s2360_s17 = scalar_lea.vmem %s1654_s4, 1024  ;;  %p2365_p12 = scmp.lt.s32.totalorder %s1654_s4, %s1654_s4 }
  0x3f   :  { %1952 = vmatprep.subr.bf16.mxu0 %v2169_v1  ;;  %1966 = vmatprep.subr.bf16.mxu1 %v2176_v5  ;;  %v2178_v8 = vld [vmem:[#allocation7 + $0x28] sm:$0xff]   ;;  %v2461_v9 = vld [vmem:[#allocation5 + $0x10] sm:$0xff]   ;;  %v2179_v10 = vld [vmem:[#allocation7 + $0x20] sm:$0xff]   ;;  %p2361_p11 = scmp.ne.s32.totalorder %s1654_s4, %s2360_s17  ;;  %p2366_p13 = scmp.lt.s32.totalorder %s2360_s17, %s2360_s17 }
  0x40   :  { %1967 = vmatpush3.bf16.msra.mxu1 %v2176_v5  ;;  %v2180_v11 = vld [vmem:[#allocation7 + $0x18] sm:$0xff]   ;;  %v2181_v13 = vld [vmem:[#allocation7 + $0x10] sm:$0xff]   ;;  %v2182_v14 = vld [vmem:[#allocation7 + $0x8] sm:$0xff]  }
  0x41   :  { %1968 = vmatprep.subr.bf16.mxu1 %v2177_v6  ;;  %v2467_v12 = vld [vmem:[#allocation5 + $0x18] sm:$0xff]   ;;  %v2183_v15 = vld [vmem:[#allocation7] sm:$0xff]   ;;  %v2185_v17 = vld [vmem:[#allocation7 + $0x70] sm:$0xff]   ;;  %p2367_p0 = por %p2366_p13, %p2365_p12 }
  0x42   :  { %1953 = vmatpush3.bf16.msra.mxu0 %v2169_v1  ;;  %v2184_v16 = vld [vmem:[#allocation7 + $0x78] sm:$0xff]   ;;  %v2186_v18 = vld [vmem:[#allocation7 + $0x68] sm:$0xff]   ;;  %v2187_v19 = vld [vmem:[#allocation7 + $0x60] sm:$0xff]  }
  0x43   :  { %1954 = vmatprep.subr.bf16.mxu0 %v2170_v2  ;;  %v2188_v20 = vld [vmem:[#allocation7 + $0x58] sm:$0xff]   ;;  %v2189_v33 = vld [vmem:[#allocation7 + $0x50] sm:$0xff]   ;;  %v2190_v34 = vld [vmem:[#allocation7 + $0x48] sm:$0xff]   ;;  %p2368_p1 = pnand %p2367_p0, %p2361_p11 }
  0x44   :  { %1969 = vmatpush3.bf16.msra.mxu1 %v2177_v6  ;;  %v2191_v35 = vld [vmem:[#allocation7 + $0x40] sm:$0xff]   ;;  %v2192_v1 = vld [vmem:[#allocation7 + $0xb8] sm:$0xff]  }
  0x45   :  { %1970 = vmatprep.subr.bf16.mxu1 %v2178_v8  ;;  %v1679_v38 = vld [vmem:[#allocation10] ss:$0 sm:$0xff]  ;;  %v2196_v6 = vld [vmem:[#allocation7 + $0x98] sm:$0xff]  }
  0x46   :  { %1955 = vmatpush3.bf16.msra.mxu0 %v2170_v2  ;;  %v2193_v2 = vld [vmem:[#allocation7 + $0xb0] sm:$0xff]   ;;  %v2195_v5 = vld [vmem:[#allocation7 + $0xa0] sm:$0xff]  }
  0x47   :  { %1956 = vmatprep.subr.bf16.mxu0 %v2171_v4 }
  0x48   :  { %1971 = vmatpush3.bf16.msra.mxu1 %v2178_v8  ;;  %v2197_v8 = vld [vmem:[#allocation7 + $0x90] sm:$0xff]  }
  0x49   :  { %1972 = vmatprep.subr.bf16.mxu1 %v2179_v10 }
  0x4a   :  { %1957 = vmatpush3.bf16.msra.mxu0 %v2171_v4  ;;  %v2194_v4 = vld [vmem:[#allocation7 + $0xa8] sm:$0xff]  }
  0x4b   :  { %1990 = vmatprep.subr.bf16.mxu0 %v2184_v16 }
  0x4c   :  { %1973 = vmatpush3.bf16.msra.mxu1 %v2179_v10 }
  0x4d   :  { %1959 = vmatmul.mubr.msk.bf16.vlgmr.msra.gmra.mxu0 %vm148_vm0, %v2459_v7  ;;  %1974 = vmatprep.subr.bf16.mxu1 %v2180_v11 }
  0x4e   :  { %1962 = vmatprep.mubr.msk.bf16.mxu0 %vm148_vm0, %v2461_v9  ;;  %1991 = vmatpush3.bf16.msra.mxu0 %v2184_v16  ;;  %v1688_v16 = vld [vmem:[#allocation10 + $0x1] ss:$0 sm:$0xff] }
  0x4f   :  { %1992 = vmatprep.subr.bf16.mxu0 %v2185_v17 }
  0x50   :  { %1975 = vmatpush3.bf16.msra.mxu1 %v2180_v11 }
  0x51   :  { %1976 = vmatprep.subr.bf16.mxu1 %v2181_v13 }
  0x52   :  { %1993 = vmatpush3.bf16.msra.mxu0 %v2185_v17 }
  0x53   :  { %1994 = vmatprep.subr.bf16.mxu0 %v2186_v18 }
  0x54   :  { %1977 = vmatpush3.bf16.msra.mxu1 %v2181_v13 }
  0x55   :  { %1963 = vmatmul.mubr.msk.bf16.gmra.mxu0 %vm148_vm0, %v2467_v12  ;;  %1978 = vmatprep.subr.bf16.mxu1 %v2182_v14 }
  0x56   :  { %1995 = vmatpush3.bf16.msra.mxu0 %v2186_v18 }
  0x57   :  { %1996 = vmatprep.subr.bf16.mxu0 %v2187_v19 }
  0x58   :  { %1979 = vmatpush3.bf16.msra.mxu1 %v2182_v14 }
  0x59   :  { %1980 = vmatprep.subr.bf16.mxu1 %v2183_v15 }
  0x5a   :  { %1997 = vmatpush3.bf16.msra.mxu0 %v2187_v19 }
  0x5b   :  { %1998 = vmatprep.subr.bf16.mxu0 %v2188_v20 }
  0x5c   :  { %1981 = vmatpush3.bf16.msra.mxu1 %v2183_v15 }
  0x5e   :  { %1999 = vmatpush3.bf16.msra.mxu0 %v2188_v20 }
  0x5f   :  { %2000 = vmatprep.subr.bf16.mxu0 %v2189_v33 }
  0x62   :  { %2001 = vmatpush3.bf16.msra.mxu0 %v2189_v33 }
  0x63   :  { %2002 = vmatprep.subr.bf16.mxu0 %v2190_v34 }
  0x66   :  { %2003 = vmatpush3.bf16.msra.mxu0 %v2190_v34 }
  0x67   :  { %2004 = vmatprep.subr.bf16.mxu0 %v2191_v35 }
  0x6a   :  { %2005 = vmatpush3.bf16.msra.mxu0 %v2191_v35 }
  0x6b   :  { %2030 = vmatprep.subr.bf16.mxu0 %v2192_v1 }
 0x10d   :  { %v1960_v21 = vpop.f32.mrf.mxu0 }
 0x10f   :  { %v195_v22 = vpop.f32.mrf.mxu0 }
 0x111   :  { %v1961_v23 = vpop.f32.mrf.mxu0 }
 0x112   :  { %v227_v26 = vpack.c.bf16 %v1961_v23, %v1960_v21 }
 0x113   :  { %v198_v24 = vpop.f32.mrf.mxu0 }
 0x114   :  { %v226_v25 = vpack.c.bf16 %v198_v24, %v195_v22 }
 0x115   :  { %v1964_v27 = vpop.f32.mrf.mxu0 }
 0x116   :  { %1982 = vmatprep.mubr.bf16.mxu1 %v226_v25 }
 0x117   :  { %v211_v28 = vpop.f32.mrf.mxu0  ;;  %1983 = vmatmul.mubr.bf16.vlgmr.msra.gmra.mxu1 %v227_v26 }
 0x119   :  { %v1965_v29 = vpop.f32.mrf.mxu0 }
 0x11a   :  { %v229_v32 = vpack.c.bf16 %v1965_v29, %v1964_v27 }
 0x11b   :  { %v214_v30 = vpop.f32.mrf.mxu0 }
 0x11c   :  { %v228_v31 = vpack.c.bf16 %v214_v30, %v211_v28 }
 0x11e   :  { %1986 = vmatprep.mubr.bf16.mxu1 %v228_v31 }
 0x11f   :  { %1987 = vmatmul.mubr.bf16.gmra.mxu1 %v229_v32 }
 0x120   :  { %2022 = vmatprep.mubr.msk.bf16.mxu1 %vm148_vm0, %v2455_v3 }
 0x1d7   :  { %v1984_v36 = vpop.f32.mrf.mxu1 }
 0x1d8   :  { %v342_v42 = vadd.f32 %v1984_v36, %v1679_v38 }
 0x1d9   :  { %v333_v37 = vpop.f32.mrf.mxu1 }
 0x1da   :  { %v334_v40 = vadd.f32 %v1679_v38, %v333_v37  ;;  %v366_v49 = vmax.f32 %v342_v42, 0.0  ;;  %v2200_v42 = vld [vmem:[#allocation7 + $0xf8] sm:$0xff]  }
 0x1db   :  { %v1985_v39 = vpop.f32.mrf.mxu1 }
 0x1dc   :  { %v345_v41 = vadd.f32 %v1985_v39, %v1679_v38  ;;  %v364_v47 = vmax.f32 %v334_v40, 0.0  ;;  %v2198_v40 = vld [vmem:[#allocation7 + $0x88] sm:$0xff]  }
 0x1dd   :  { %v336_v43 = vpop.f32.mrf.mxu1 }
 0x1de   :  { %v337_v44 = vadd.f32 %v1679_v38, %v336_v43  ;;  %v367_v45 = vmax.f32 %v345_v41, 0.0  ;;  %v2199_v41 = vld [vmem:[#allocation7 + $0x80] sm:$0xff]   ;;  %v2201_v43 = vld [vmem:[#allocation7 + $0xf0] sm:$0xff]  }
 0x1df   :  { %v1988_v46 = vpop.f32.mrf.mxu1 }
 0x1e0   :  { %v365_v48 = vmax.f32 %v337_v44, 0.0  ;;  %v373_v52 = vpack.c.bf16 %v367_v45, %v366_v49  ;;  %v358_v56 = vadd.f32 %v1988_v46, %v1679_v38  ;;  %v2202_v44 = vld [vmem:[#allocation7 + $0xe8] sm:$0xff]   ;;  %v2203_v45 = vld [vmem:[#allocation7 + $0xe0] sm:$0xff]   ;;  %v2204_v46 = vld [vmem:[#allocation7 + $0xd8] sm:$0xff]  }
 0x1e1   :  { %v349_v50 = vpop.f32.mrf.mxu1 }
 0x1e2   :  { %v372_v51 = vpack.c.bf16 %v365_v48, %v364_v47  ;;  %v350_v54 = vadd.f32 %v1679_v38, %v349_v50  ;;  %v370_v62 = vmax.f32 %v358_v56, 0.0 }
 0x1e3   :  { %v1989_v53 = vpop.f32.mrf.mxu1 }
 0x1e4   :  { %v361_v55 = vadd.f32 %v1989_v53, %v1679_v38  ;;  %2006 = vmatprep.mubr.bf16.mxu0 %v372_v51  ;;  %v368_v60 = vmax.f32 %v350_v54, 0.0 }
 0x1e5   :  { %v352_v57 = vpop.f32.mrf.mxu1  ;;  %2007 = vmatmul.mubr.bf16.vlgmr.msra.gmra.mxu0 %v373_v52 }
 0x1e6   :  { %v353_v58 = vadd.f32 %v1679_v38, %v352_v57  ;;  %v371_v59 = vmax.f32 %v361_v55, 0.0  ;;  %2031 = vmatpush3.bf16.msra.mxu0 %v2192_v1 }
 0x1e7   :  { %2032 = vmatprep.subr.bf16.mxu0 %v2193_v2 }
 0x1e8   :  { %v369_v61 = vmax.f32 %v353_v58, 0.0  ;;  %v375_v0 = vpack.c.bf16 %v371_v59, %v370_v62  ;;  %v2205_v59 = vld [vmem:[#allocation7 + $0xd0] sm:$0xff]  }
 0x1ea   :  { %v374_v63 = vpack.c.bf16 %v369_v61, %v368_v60  ;;  %2033 = vmatpush3.bf16.msra.mxu0 %v2193_v2  ;;  %v2206_v60 = vld [vmem:[#allocation7 + $0xc8] sm:$0xff]   ;;  %v2207_v61 = vld [vmem:[#allocation7 + $0xc0] sm:$0xff]  }
 0x1eb   :  { %2034 = vmatprep.subr.bf16.mxu0 %v2194_v4 }
 0x1ec   :  { %2010 = vmatprep.mubr.bf16.mxu0 %v374_v63 }
 0x1ed   :  { %2011 = vmatmul.mubr.bf16.gmra.mxu0 %v375_v0  ;;  %v1701_v0 = vld [vmem:[#allocation10 + $0x2] ss:$0 sm:$0xff] }
 0x1ee   :  { %2035 = vmatpush3.bf16.msra.mxu0 %v2194_v4 }
 0x1ef   :  { %2036 = vmatprep.subr.bf16.mxu0 %v2195_v5 }
 0x1f2   :  { %2037 = vmatpush3.bf16.msra.mxu0 %v2195_v5 }
 0x1f3   :  { %2038 = vmatprep.subr.bf16.mxu0 %v2196_v6 }
 0x1f6   :  { %2039 = vmatpush3.bf16.msra.mxu0 %v2196_v6 }
 0x1f7   :  { %2040 = vmatprep.subr.bf16.mxu0 %v2197_v8 }
 0x1fa   :  { %2041 = vmatpush3.bf16.msra.mxu0 %v2197_v8 }
 0x1fb   :  { %2042 = vmatprep.subr.bf16.mxu0 %v2198_v40 }
 0x1fe   :  { %2043 = vmatpush3.bf16.msra.mxu0 %v2198_v40 }
 0x1ff   :  { %2044 = vmatprep.subr.bf16.mxu0 %v2199_v41 }
 0x202   :  { %2045 = vmatpush3.bf16.msra.mxu0 %v2199_v41 }
 0x2a5   :  { %v2008_v10 = vpop.f32.mrf.mxu0 }
 0x2a6   :  { %v489_v27 = vadd.f32 %v2008_v10, %v1688_v16 }
 0x2a7   :  { %v480_v11 = vpop.f32.mrf.mxu0 }
 0x2a8   :  { %v513_v34 = vmax.f32 %v489_v27, 0.0  ;;  %v481_v35 = vadd.f32 %v1688_v16, %v480_v11 }
 0x2a9   :  { %v2009_v13 = vpop.f32.mrf.mxu0 }
 0x2aa   :  { %v492_v23 = vadd.f32 %v2009_v13, %v1688_v16  ;;  %v511_v38 = vmax.f32 %v481_v35, 0.0  ;;  %v2211_v35 = vld [vmem:[#allocation7 + $0x120] sm:$0xff]  }
 0x2ab   :  { %v483_v14 = vpop.f32.mrf.mxu0 }
 0x2ac   :  { %v514_v31 = vmax.f32 %v492_v23, 0.0  ;;  %v484_v32 = vadd.f32 %v1688_v16, %v483_v14 }
 0x2ad   :  { %v2012_v15 = vpop.f32.mrf.mxu0 }
 0x2ae   :  { %v505_v18 = vadd.f32 %v2012_v15, %v1688_v16  ;;  %v2480_v36 = vpack.c.bf16 %v514_v31, %v513_v34  ;;  %v512_v37 = vmax.f32 %v484_v32, 0.0  ;;  %v2208_v31 = vld [vmem:[#allocation7 + $0x138] sm:$0xff]   ;;  %v2209_v32 = vld [vmem:[#allocation7 + $0x130] sm:$0xff]   ;;  %v2210_v34 = vld [vmem:[#allocation7 + $0x128] sm:$0xff]  }
 0x2af   :  { %v496_v17 = vpop.f32.mrf.mxu0 }
 0x2b0   :  { %v497_v20 = vadd.f32 %v1688_v16, %v496_v17  ;;  %v517_v24 = vmax.f32 %v505_v18, 0.0  ;;  %v2484_v39 = vpack.c.bf16 %v512_v37, %v511_v38  ;;  %v2212_v37 = vld [vmem:[#allocation7 + $0x118] sm:$0xff]   ;;  %v2213_v38 = vld [vmem:[#allocation7 + $0x110] sm:$0xff]  }
 0x2b1   :  { %v2013_v19 = vpop.f32.mrf.mxu0 }
 0x2b2   :  { %v508_v21 = vadd.f32 %v2013_v19, %v1688_v16  ;;  %v515_v28 = vmax.f32 %v497_v20, 0.0 }
 0x2b3   :  { %v499_v22 = vpop.f32.mrf.mxu0 }
 0x2b4   :  { %v518_v25 = vmax.f32 %v508_v21, 0.0  ;;  %v500_v26 = vadd.f32 %v1688_v16, %v499_v22 }
 0x2b6   :  { %v2473_v29 = vpack.c.bf16 %v518_v25, %v517_v24  ;;  %v516_v30 = vmax.f32 %v500_v26, 0.0 }
 0x2b8   :  { %v2475_v33 = vpack.c.bf16 %v516_v30, %v515_v28  ;;  %2014 = vmatprep.subr.bf16.mxu1 %v2473_v29 }
 0x2b9   :  { %2015 = vmatpush3.bf16.msra.mxu1 %v2473_v29 }
 0x2ba   :  { %2016 = vmatprep.subr.bf16.mxu1 %v2475_v33 }
 0x2bd   :  { %2017 = vmatpush3.bf16.msra.mxu1 %v2475_v33 }
 0x2be   :  { %2018 = vmatprep.subr.bf16.mxu1 %v2480_v36 }
 0x2c1   :  { %2019 = vmatpush3.bf16.msra.mxu1 %v2480_v36 }
 0x2c2   :  { %2020 = vmatprep.subr.bf16.mxu1 %v2484_v39 }
 0x2c5   :  { %2021 = vmatpush3.bf16.msra.mxu1 %v2484_v39 }
 0x2c6   :  { %2054 = vmatprep.subr.bf16.mxu1 %v2200_v42 }
 0x2c8   :  { %2023 = vmatmul.mubr.msk.bf16.vlgmr.msra.gmra.mxu1 %vm148_vm0, %v2459_v7 }
 0x2c9   :  { %2026 = vmatprep.mubr.msk.bf16.mxu1 %vm148_vm0, %v2461_v9  ;;  %2055 = vmatpush3.bf16.msra.mxu1 %v2200_v42 }
 0x2ca   :  { %2056 = vmatprep.subr.bf16.mxu1 %v2201_v43 }
 0x2cd   :  { %2057 = vmatpush3.bf16.msra.mxu1 %v2201_v43 }
 0x2ce   :  { %2058 = vmatprep.subr.bf16.mxu1 %v2202_v44 }
 0x2d0   :  { %2027 = vmatmul.mubr.msk.bf16.gmra.mxu1 %vm148_vm0, %v2467_v12 }
 0x2d1   :  { %2059 = vmatpush3.bf16.msra.mxu1 %v2202_v44 }
 0x2d2   :  { %2060 = vmatprep.subr.bf16.mxu1 %v2203_v45 }
 0x2d5   :  { %2061 = vmatpush3.bf16.msra.mxu1 %v2203_v45  ;;  %v1710_v45 = vld [vmem:[#allocation10 + $0x3] ss:$0 sm:$0xff] }
 0x2d6   :  { %2062 = vmatprep.subr.bf16.mxu1 %v2204_v46 }
 0x2d9   :  { %2063 = vmatpush3.bf16.msra.mxu1 %v2204_v46 }
 0x2da   :  { %2064 = vmatprep.subr.bf16.mxu1 %v2205_v59 }
 0x2dd   :  { %2065 = vmatpush3.bf16.msra.mxu1 %v2205_v59 }
 0x2de   :  { %2066 = vmatprep.subr.bf16.mxu1 %v2206_v60 }
 0x2e1   :  { %2067 = vmatpush3.bf16.msra.mxu1 %v2206_v60 }
 0x2e2   :  { %2068 = vmatprep.subr.bf16.mxu1 %v2207_v61 }
 0x2e5   :  { %2069 = vmatpush3.bf16.msra.mxu1 %v2207_v61 }
 0x2e6   :  { %2094 = vmatprep.subr.bf16.mxu1 %v2208_v31 }
 0x388   :  { %v2024_v47 = vpop.f32.mrf.mxu1 }
 0x38a   :  { %v557_v48 = vpop.f32.mrf.mxu1 }
 0x38c   :  { %v2025_v49 = vpop.f32.mrf.mxu1 }
 0x38d   :  { %v589_v52 = vpack.c.bf16 %v2025_v49, %v2024_v47 }
 0x38e   :  { %v560_v50 = vpop.f32.mrf.mxu1 }
 0x38f   :  { %v588_v51 = vpack.c.bf16 %v560_v50, %v557_v48 }
 0x390   :  { %v2028_v53 = vpop.f32.mrf.mxu1 }
 0x391   :  { %2046 = vmatprep.mubr.bf16.mxu0 %v588_v51 }
 0x392   :  { %v573_v54 = vpop.f32.mrf.mxu1  ;;  %2047 = vmatmul.mubr.bf16.vlgmr.msra.gmra.mxu0 %v589_v52 }
 0x394   :  { %v2029_v55 = vpop.f32.mrf.mxu1 }
 0x395   :  { %v591_v58 = vpack.c.bf16 %v2029_v55, %v2028_v53 }
 0x396   :  { %v576_v56 = vpop.f32.mrf.mxu1 }
 0x397   :  { %v590_v57 = vpack.c.bf16 %v576_v56, %v573_v54 }
 0x399   :  { %2050 = vmatprep.mubr.bf16.mxu0 %v590_v57 }
 0x39a   :  { %2051 = vmatmul.mubr.bf16.gmra.mxu0 %v591_v58 }
 0x39b   :  { %2086 = vmatprep.mubr.msk.bf16.mxu0 %vm148_vm0, %v2455_v3 }
 0x452   :  { %v2048_v62 = vpop.f32.mrf.mxu0 }
 0x453   :  { %v705_v5 = vadd.f32 %v2048_v62, %v1701_v0 }
 0x454   :  { %v696_v63 = vpop.f32.mrf.mxu0 }
 0x455   :  { %v697_v2 = vadd.f32 %v1701_v0, %v696_v63  ;;  %v729_v14 = vmax.f32 %v705_v5, 0.0 }
 0x456   :  { %v2049_v1 = vpop.f32.mrf.mxu0 }
 0x457   :  { %v708_v4 = vadd.f32 %v2049_v1, %v1701_v0  ;;  %v727_v11 = vmax.f32 %v697_v2, 0.0 }
 0x458   :  { %v699_v6 = vpop.f32.mrf.mxu0 }
 0x459   :  { %v700_v8 = vadd.f32 %v1701_v0, %v699_v6  ;;  %v730_v10 = vmax.f32 %v708_v4, 0.0  ;;  %v2214_v6 = vld [vmem:[#allocation7 + $0x108] sm:$0xff]  }
 0x45a   :  { %v2052_v3 = vpop.f32.mrf.mxu0 }
 0x45b   :  { %v728_v13 = vmax.f32 %v700_v8, 0.0  ;;  %v736_v17 = vpack.c.bf16 %v730_v10, %v729_v14  ;;  %v721_v21 = vadd.f32 %v2052_v3, %v1701_v0  ;;  %v2215_v8 = vld [vmem:[#allocation7 + $0x100] sm:$0xff]   ;;  %v2216_v10 = vld [vmem:[#allocation8 + $0x78] sm:$0xff]  }
 0x45c   :  { %v712_v15 = vpop.f32.mrf.mxu0  ;;  %v2232_v3 = vld [vmem:[#allocation7 + $0x178] sm:$0xff]  }
 0x45d   :  { %v735_v16 = vpack.c.bf16 %v728_v13, %v727_v11  ;;  %v713_v19 = vadd.f32 %v1701_v0, %v712_v15  ;;  %v733_v27 = vmax.f32 %v721_v21, 0.0  ;;  %v2233_v11 = vld [vmem:[#allocation7 + $0x170] sm:$0xff]  }
 0x45e   :  { %v2053_v18 = vpop.f32.mrf.mxu0  ;;  %v2218_v21 = vld [vmem:[#allocation8 + $0x70] sm:$0xff]  }
 0x45f   :  { %v724_v20 = vadd.f32 %v2053_v18, %v1701_v0  ;;  %2070 = vmatprep.mubr.bf16.mxu1 %v735_v16  ;;  %v731_v25 = vmax.f32 %v713_v19, 0.0  ;;  %v2217_v18 = vld [vmem:[#allocation8 + $0x38] sm:$0xff]  }
 0x460   :  { %v715_v22 = vpop.f32.mrf.mxu0  ;;  %2071 = vmatmul.mubr.bf16.vlgmr.msra.gmra.mxu1 %v736_v17 }
 0x461   :  { %v716_v23 = vadd.f32 %v1701_v0, %v715_v22  ;;  %v734_v24 = vmax.f32 %v724_v20, 0.0  ;;  %2095 = vmatpush3.bf16.msra.mxu1 %v2208_v31  ;;  %v2222_v31 = vld [vmem:[#allocation8 + $0x60] sm:$0xff]  }
 0x462   :  { %2096 = vmatprep.subr.bf16.mxu1 %v2209_v32 }
 0x463   :  { %v732_v26 = vmax.f32 %v716_v23, 0.0  ;;  %v738_v30 = vpack.c.bf16 %v734_v24, %v733_v27  ;;  %v2219_v23 = vld [vmem:[#allocation8 + $0x30] sm:$0xff]  }
 0x465   :  { %v737_v28 = vpack.c.bf16 %v732_v26, %v731_v25  ;;  %2097 = vmatpush3.bf16.msra.mxu1 %v2209_v32  ;;  %v2220_v25 = vld [vmem:[#allocation8 + $0x68] sm:$0xff]   ;;  %v2223_v32 = vld [vmem:[#allocation8 + $0x20] sm:$0xff]  }
 0x466   :  { %2098 = vmatprep.subr.bf16.mxu1 %v2210_v34 }
 0x467   :  { %2074 = vmatprep.mubr.bf16.mxu1 %v737_v28 }
 0x468   :  { %2075 = vmatmul.mubr.bf16.gmra.mxu1 %v738_v30  ;;  %v2221_v30 = vld [vmem:[#allocation8 + $0x28] sm:$0xff]  }
 0x469   :  { %2099 = vmatpush3.bf16.msra.mxu1 %v2210_v34  ;;  %v2224_v34 = vld [vmem:[#allocation8 + $0x58] sm:$0xff]  }
 0x46a   :  { %2100 = vmatprep.subr.bf16.mxu1 %v2211_v35 }
 0x46d   :  { %2101 = vmatpush3.bf16.msra.mxu1 %v2211_v35  ;;  %v2225_v35 = vld [vmem:[#allocation8 + $0x18] sm:$0xff]  }
 0x46e   :  { %2102 = vmatprep.subr.bf16.mxu1 %v2212_v37 }
 0x471   :  { %2103 = vmatpush3.bf16.msra.mxu1 %v2212_v37  ;;  %v2226_v37 = vld [vmem:[#allocation8 + $0x50] sm:$0xff]  }
 0x472   :  { %2104 = vmatprep.subr.bf16.mxu1 %v2213_v38 }
 0x475   :  { %2105 = vmatpush3.bf16.msra.mxu1 %v2213_v38  ;;  %v2227_v38 = vld [vmem:[#allocation8 + $0x10] sm:$0xff]  }
 0x476   :  { %2106 = vmatprep.subr.bf16.mxu1 %v2214_v6 }
 0x479   :  { %2107 = vmatpush3.bf16.msra.mxu1 %v2214_v6 }
 0x47a   :  { %2108 = vmatprep.subr.bf16.mxu1 %v2215_v8 }
 0x47d   :  { %2109 = vmatpush3.bf16.msra.mxu1 %v2215_v8 }
 0x47e   :  { %1870 = vmatprep.subr.bf16.mxu1 %v2216_v10 }
 0x520   :  { %v2072_v40 = vpop.f32.mrf.mxu1 }
 0x521   :  { %v852_v56 = vadd.f32 %v2072_v40, %v1710_v45  ;;  %v2228_v40 = vld [vmem:[#allocation8 + $0x48] sm:$0xff]  }
 0x522   :  { %v843_v41 = vpop.f32.mrf.mxu1 }
 0x523   :  { %v876_v63 = vmax.f32 %v852_v56, 0.0  ;;  %v844_v0 = vadd.f32 %v1710_v45, %v843_v41  ;;  %v2229_v41 = vld [vmem:[#allocation8 + $0x8] sm:$0xff]   ;;  %v2249_v56 = vld [vmem:[#allocation8 + $0x98] sm:$0xff]  }
 0x524   :  { %v2073_v42 = vpop.f32.mrf.mxu1 }
 0x525   :  { %v855_v52 = vadd.f32 %v2073_v42, %v1710_v45  ;;  %v874_v4 = vmax.f32 %v844_v0, 0.0  ;;  %v2230_v42 = vld [vmem:[#allocation8 + $0x40] sm:$0xff]  }
 0x526   :  { %v846_v43 = vpop.f32.mrf.mxu1 }
 0x527   :  { %v877_v60 = vmax.f32 %v855_v52, 0.0  ;;  %v847_v61 = vadd.f32 %v1710_v45, %v846_v43  ;;  %v2231_v43 = vld [vmem:[#allocation8] sm:$0xff]   ;;  %v2245_v52 = vld [vmem:[#allocation8 + $0xa8] sm:$0xff]  }
 0x528   :  { %v2076_v44 = vpop.f32.mrf.mxu1 }
 0x529   :  { %v868_v47 = vadd.f32 %v2076_v44, %v1710_v45  ;;  %v2504_v1 = vpack.c.bf16 %v877_v60, %v876_v63  ;;  %v875_v2 = vmax.f32 %v847_v61, 0.0  ;;  %v2257_v44 = vld [vmem:[#allocation2 + $0x8] sm:$0xff]   ;;  %v1723_v60 = vld [vmem:[#allocation10 + $0x4] ss:$0 sm:$0xff] }
 0x52a   :  { %v859_v46 = vpop.f32.mrf.mxu1 }
 0x52b   :  { %v860_v49 = vadd.f32 %v1710_v45, %v859_v46  ;;  %v880_v53 = vmax.f32 %v868_v47, 0.0  ;;  %v2508_v5 = vpack.c.bf16 %v875_v2, %v874_v4  ;;  %v2259_v46 = vld [vmem:[#allocation2 + $0x18] sm:$0xff]   ;;  %v2237_v47 = vld [vmem:[#allocation7 + $0x150] sm:$0xff]  }
 0x52c   :  { %v2077_v48 = vpop.f32.mrf.mxu1 }
 0x52d   :  { %v871_v50 = vadd.f32 %v2077_v48, %v1710_v45  ;;  %v878_v57 = vmax.f32 %v860_v49, 0.0  ;;  %v2238_v48 = vld [vmem:[#allocation7 + $0x148] sm:$0xff]   ;;  %v2239_v49 = vld [vmem:[#allocation7 + $0x140] sm:$0xff]  }
 0x52e   :  { %v862_v51 = vpop.f32.mrf.mxu1 }
 0x52f   :  { %v881_v54 = vmax.f32 %v871_v50, 0.0  ;;  %v863_v55 = vadd.f32 %v1710_v45, %v862_v51  ;;  %v2258_v45 = vld [vmem:[#allocation2 + $0x10] sm:$0xff]   ;;  %v2241_v50 = vld [vmem:[#allocation8 + $0xb8] sm:$0xff]  }
 0x530   :  { %v2242_v51 = vld [vmem:[#allocation8 + $0xf0] sm:$0xff]  }
 0x531   :  { %v2497_v58 = vpack.c.bf16 %v881_v54, %v880_v53  ;;  %v879_v59 = vmax.f32 %v863_v55, 0.0  ;;  %v2246_v53 = vld [vmem:[#allocation8 + $0xe0] sm:$0xff]   ;;  %v2248_v55 = vld [vmem:[#allocation8 + $0xd8] sm:$0xff]  }
 0x532   :  { %v2247_v54 = vld [vmem:[#allocation8 + $0xa0] sm:$0xff]  }
 0x533   :  { %v2499_v62 = vpack.c.bf16 %v879_v59, %v878_v57  ;;  %2078 = vmatprep.subr.bf16.mxu0 %v2497_v58 }
 0x534   :  { %2079 = vmatpush3.bf16.msra.mxu0 %v2497_v58 }
 0x535   :  { %2080 = vmatprep.subr.bf16.mxu0 %v2499_v62 }
 0x538   :  { %2081 = vmatpush3.bf16.msra.mxu0 %v2499_v62 }
 0x539   :  { %2082 = vmatprep.subr.bf16.mxu0 %v2504_v1 }
 0x53c   :  { %2083 = vmatpush3.bf16.msra.mxu0 %v2504_v1 }
 0x53d   :  { %2084 = vmatprep.subr.bf16.mxu0 %v2508_v5 }
 0x540   :  { %2085 = vmatpush3.bf16.msra.mxu0 %v2508_v5 }
 0x541   :  { %2118 = vmatprep.subr.bf16.mxu0 %v2232_v3 }
 0x543   :  { %2087 = vmatmul.mubr.msk.bf16.vlgmr.msra.gmra.mxu0 %vm148_vm0, %v2459_v7  ;;  %v2234_v7 = vld [vmem:[#allocation7 + $0x168] sm:$0xff]  }
 0x544   :  { %2090 = vmatprep.mubr.msk.bf16.mxu0 %vm148_vm0, %v2461_v9  ;;  %2119 = vmatpush3.bf16.msra.mxu0 %v2232_v3  ;;  %v2235_v9 = vld [vmem:[#allocation7 + $0x160] sm:$0xff]  }
 0x545   :  { %2120 = vmatprep.subr.bf16.mxu0 %v2233_v11 }
 0x548   :  { %2121 = vmatpush3.bf16.msra.mxu0 %v2233_v11 }
 0x549   :  { %2122 = vmatprep.subr.bf16.mxu0 %v2234_v7 }
 0x54b   :  { %2091 = vmatmul.mubr.msk.bf16.gmra.mxu0 %vm148_vm0, %v2467_v12  ;;  %v2236_v12 = vld [vmem:[#allocation7 + $0x158] sm:$0xff]  }
 0x54c   :  { %2123 = vmatpush3.bf16.msra.mxu0 %v2234_v7 }
 0x54d   :  { %2124 = vmatprep.subr.bf16.mxu0 %v2235_v9 }
 0x550   :  { %2125 = vmatpush3.bf16.msra.mxu0 %v2235_v9 }
 0x551   :  { %2126 = vmatprep.subr.bf16.mxu0 %v2236_v12 }
 0x554   :  { %2127 = vmatpush3.bf16.msra.mxu0 %v2236_v12 }
 0x555   :  { %2128 = vmatprep.subr.bf16.mxu0 %v2237_v47 }
 0x558   :  { %2129 = vmatpush3.bf16.msra.mxu0 %v2237_v47 }
 0x559   :  { %2130 = vmatprep.subr.bf16.mxu0 %v2238_v48 }
 0x55c   :  { %2131 = vmatpush3.bf16.msra.mxu0 %v2238_v48 }
 0x55d   :  { %2132 = vmatprep.subr.bf16.mxu0 %v2239_v49 }
 0x560   :  { %2133 = vmatpush3.bf16.msra.mxu0 %v2239_v49 }
 0x603   :  { %v2088_v13 = vpop.f32.mrf.mxu0 }
 0x605   :  { %v920_v14 = vpop.f32.mrf.mxu0 }
 0x607   :  { %v2089_v15 = vpop.f32.mrf.mxu0 }
 0x608   :  { %v952_v19 = vpack.c.bf16 %v2089_v15, %v2088_v13 }
 0x609   :  { %v923_v16 = vpop.f32.mrf.mxu0 }
 0x60a   :  { %v951_v17 = vpack.c.bf16 %v923_v16, %v920_v14 }
 0x60b   :  { %v2092_v20 = vpop.f32.mrf.mxu0 }
 0x60c   :  { %2110 = vmatprep.mubr.bf16.mxu1 %v951_v17 }
 0x60d   :  { %v936_v22 = vpop.f32.mrf.mxu0  ;;  %2111 = vmatmul.mubr.bf16.vlgmr.msra.gmra.mxu1 %v952_v19 }
 0x60e   :  { %1871 = vmatpush3.bf16.msra.mxu1 %v2217_v18 }
 0x60f   :  { %v2093_v24 = vpop.f32.mrf.mxu0  ;;  %1872 = vmatprep.subr.bf16.mxu1 %v2218_v21 }
 0x610   :  { %v954_v26 = vpack.c.bf16 %v2093_v24, %v2092_v20 }
 0x611   :  { %v939_v27 = vpop.f32.mrf.mxu0 }
 0x612   :  { %v953_v28 = vpack.c.bf16 %v939_v27, %v936_v22  ;;  %1873 = vmatpush3.bf16.msra.mxu1 %v2219_v23  ;;  %v2251_v27 = vld [vmem:[#allocation8 + $0x90] sm:$0xff]  }
 0x613   :  { %1874 = vmatprep.subr.bf16.mxu1 %v2220_v25 }
 0x614   :  { %2114 = vmatprep.mubr.bf16.mxu1 %v953_v28  ;;  %v2252_v28 = vld [vmem:[#allocation8 + $0xc8] sm:$0xff]  }
 0x615   :  { %2115 = vmatmul.mubr.bf16.gmra.mxu1 %v954_v26  ;;  %v2250_v26 = vld [vmem:[#allocation8 + $0xd0] sm:$0xff]  }
 0x616   :  { %1875 = vmatpush3.bf16.msra.mxu1 %v2221_v30  ;;  %1542 = vmatprep.mubr.bf16.mxu1 %v2484_v39  ;;  %v2256_v39 = vld [vmem:[#allocation2] sm:$0xff]   ;;  %v2253_v30 = vld [vmem:[#allocation8 + $0x88] sm:$0xff]  }
 0x617   :  { %1876 = vmatprep.subr.bf16.mxu1 %v2222_v31  ;;  %v2254_v31 = vld [vmem:[#allocation8 + $0xc0] sm:$0xff]  }
 0x61a   :  { %1877 = vmatpush3.bf16.msra.mxu1 %v2223_v32  ;;  %v2255_v32 = vld [vmem:[#allocation8 + $0x80] sm:$0xff]  }
 0x61b   :  { %1878 = vmatprep.subr.bf16.mxu1 %v2224_v34 }
 0x61e   :  { %1879 = vmatpush3.bf16.msra.mxu1 %v2225_v35 }
 0x61f   :  { %1880 = vmatprep.subr.bf16.mxu1 %v2226_v37  ;;  %v1732_v37 = vld [vmem:[#allocation10 + $0x5] ss:$0 sm:$0xff] }
 0x622   :  { %1881 = vmatpush3.bf16.msra.mxu1 %v2227_v38 }
 0x623   :  { %1882 = vmatprep.subr.bf16.mxu1 %v2228_v40 }
 0x626   :  { %1883 = vmatpush3.bf16.msra.mxu1 %v2229_v41 }
 0x627   :  { %1884 = vmatprep.subr.bf16.mxu1 %v2230_v42 }
 0x62a   :  { %1885 = vmatpush3.bf16.msra.mxu1 %v2231_v43 }
 0x62d   :  { %1543 = vmatmul.mubr.bf16.vlgmr.msra.gmra.mxu1 %v2256_v39 }
 0x62e   :  { %1550 = vmatprep.mubr.bf16.mxu1 %v2480_v36  ;;  %v2240_v36 = vld [vmem:[#allocation8 + $0xf8] sm:$0xff]  }
 0x62f   :  { %1910 = vmatprep.subr.bf16.mxu0 %v2240_v36  ;;  %2142 = vmatprep.subr.bf16.mxu1 %v2240_v36 }
 0x630   :  { %2150 = vmatpush3.bf16.msra.mxu1 %v2241_v50 }
 0x631   :  { %2143 = vmatprep.subr.bf16.mxu1 %v2242_v51 }
 0x635   :  { %1551 = vmatmul.mubr.bf16.gmra.mxu1 %v2257_v44 }
 0x636   :  { %1558 = vmatprep.mubr.bf16.mxu1 %v2475_v33  ;;  %v2243_v33 = vld [vmem:[#allocation8 + $0xb0] sm:$0xff]  }
 0x637   :  { %2151 = vmatpush3.bf16.msra.mxu1 %v2243_v33 }
 0x63d   :  { %1559 = vmatmul.mubr.bf16.gmra.mxu1 %v2258_v45 }
 0x63e   :  { %1566 = vmatprep.mubr.bf16.mxu1 %v2473_v29  ;;  %v2244_v29 = vld [vmem:[#allocation8 + $0xe8] sm:$0xff]  }
 0x63f   :  { %2144 = vmatprep.subr.bf16.mxu1 %v2244_v29 }
 0x640   :  { %2152 = vmatpush3.bf16.msra.mxu1 %v2245_v52 }
 0x641   :  { %2145 = vmatprep.subr.bf16.mxu1 %v2246_v53 }
 0x644   :  { %2153 = vmatpush3.bf16.msra.mxu1 %v2247_v54 }
 0x645   :  { %1567 = vmatmul.mubr.bf16.gmra.mxu1 %v2259_v46  ;;  %2146 = vmatprep.subr.bf16.mxu1 %v2248_v55 }
 0x648   :  { %2154 = vmatpush3.bf16.msra.mxu1 %v2249_v56 }
 0x649   :  { %2147 = vmatprep.subr.bf16.mxu1 %v2250_v26 }
 0x64c   :  { %2155 = vmatpush3.bf16.msra.mxu1 %v2251_v27 }
 0x64d   :  { %2148 = vmatprep.subr.bf16.mxu1 %v2252_v28 }
 0x650   :  { %2156 = vmatpush3.bf16.msra.mxu1 %v2253_v30 }
 0x651   :  { %2149 = vmatprep.subr.bf16.mxu1 %v2254_v31 }
 0x654   :  { %2157 = vmatpush3.bf16.msra.mxu1 %v2255_v32 }
 0x6cd   :  { %v2112_v57 = vpop.f32.mrf.mxu1 }
 0x6ce   :  { %v1068_v2 = vadd.f32 %v2112_v57, %v1723_v60 }
 0x6cf   :  { %v1059_v59 = vpop.f32.mrf.mxu1 }
 0x6d0   :  { %v1060_v63 = vadd.f32 %v1723_v60, %v1059_v59  ;;  %v1092_v7 = vmax.f32 %v1068_v2, 0.0 }
 0x6d1   :  { %v2113_v61 = vpop.f32.mrf.mxu1 }
 0x6d2   :  { %v1071_v0 = vadd.f32 %v2113_v61, %v1723_v60  ;;  %v1090_v3 = vmax.f32 %v1060_v63, 0.0 }
 0x6d3   :  { %v1062_v4 = vpop.f32.mrf.mxu1 }
 0x6d4   :  { %v1063_v6 = vadd.f32 %v1723_v60, %v1062_v4  ;;  %v1093_v8 = vmax.f32 %v1071_v0, 0.0 }
 0x6d5   :  { %v2116_v10 = vpop.f32.mrf.mxu1 }
 0x6d6   :  { %v1091_v11 = vmax.f32 %v1063_v6, 0.0  ;;  %v1099_v13 = vpack.c.bf16 %v1093_v8, %v1092_v7  ;;  %v1084_v17 = vadd.f32 %v2116_v10, %v1723_v60 }
 0x6d7   :  { %v1075_v9 = vpop.f32.mrf.mxu1 }
 0x6d8   :  { %v1098_v12 = vpack.c.bf16 %v1091_v11, %v1090_v3  ;;  %v1076_v15 = vadd.f32 %v1723_v60, %v1075_v9  ;;  %v1096_v23 = vmax.f32 %v1084_v17, 0.0 }
 0x6d9   :  { %v2117_v14 = vpop.f32.mrf.mxu1 }
 0x6da   :  { %v1087_v16 = vadd.f32 %v2117_v14, %v1723_v60  ;;  %2134 = vmatprep.mubr.bf16.mxu0 %v1098_v12  ;;  %v1094_v21 = vmax.f32 %v1076_v15, 0.0 }
 0x6db   :  { %v1078_v18 = vpop.f32.mrf.mxu1  ;;  %2135 = vmatmul.mubr.bf16.vlgmr.msra.gmra.mxu0 %v1099_v13 }
 0x6dc   :  { %v1079_v19 = vadd.f32 %v1723_v60, %v1078_v18  ;;  %1911 = vmatpush3.bf16.msra.mxu0 %v2241_v50  ;;  %v1097_v20 = vmax.f32 %v1087_v16, 0.0 }
 0x6dd   :  { %1912 = vmatprep.subr.bf16.mxu0 %v2242_v51 }
 0x6de   :  { %v1095_v22 = vmax.f32 %v1079_v19, 0.0  ;;  %v1101_v25 = vpack.c.bf16 %v1097_v20, %v1096_v23 }
 0x6e0   :  { %v1100_v24 = vpack.c.bf16 %v1095_v22, %v1094_v21  ;;  %1913 = vmatpush3.bf16.msra.mxu0 %v2243_v33 }
 0x6e1   :  { %1914 = vmatprep.subr.bf16.mxu0 %v2244_v29 }
 0x6e2   :  { %2138 = vmatprep.mubr.bf16.mxu0 %v1100_v24 }
 0x6e3   :  { %2139 = vmatmul.mubr.bf16.gmra.mxu0 %v1101_v25 }
 0x6e4   :  { %1915 = vmatpush3.bf16.msra.mxu0 %v2245_v52 }
 0x6e5   :  { %1916 = vmatprep.subr.bf16.mxu0 %v2246_v53 }
 0x6e8   :  { %1917 = vmatpush3.bf16.msra.mxu0 %v2247_v54 }
 0x6e9   :  { %1918 = vmatprep.subr.bf16.mxu0 %v2248_v55 }
 0x6ec   :  { %1919 = vmatpush3.bf16.msra.mxu0 %v2249_v56 }
 0x6ed   :  { %1920 = vmatprep.subr.bf16.mxu0 %v2250_v26  ;;  %v1886_v63 = vpop.f32.mrf.mxu1 }
 0x6ef   :  { %v1887_v0 = vpop.f32.mrf.mxu1 }
 0x6f0   :  { %1921 = vmatpush3.bf16.msra.mxu0 %v2251_v27  ;;  %v1888_v14 = vadd.f32 %v1887_v0, %v1886_v63 }
 0x6f1   :  { %1922 = vmatprep.subr.bf16.mxu0 %v2252_v28 }
 0x6f4   :  { %1923 = vmatpush3.bf16.msra.mxu0 %v2253_v30 }
 0x6f5   :  { %1924 = vmatprep.subr.bf16.mxu0 %v2254_v31 }
 0x6f8   :  { %1925 = vmatpush3.bf16.msra.mxu0 %v2255_v32 }
 0x79b   :  { %v2136_v34 = vpop.f32.mrf.mxu0 }
 0x79c   :  { %v1215_v43 = vadd.f32 %v2136_v34, %v1732_v37 }
 0x79d   :  { %v1206_v35 = vpop.f32.mrf.mxu0 }
 0x79e   :  { %v1207_v40 = vadd.f32 %v1732_v37, %v1206_v35  ;;  %v1239_v49 = vmax.f32 %v1215_v43, 0.0 }
 0x79f   :  { %v2137_v38 = vpop.f32.mrf.mxu0 }
 0x7a0   :  { %v1218_v41 = vadd.f32 %v2137_v38, %v1732_v37  ;;  %v1237_v45 = vmax.f32 %v1207_v40, 0.0 }
 0x7a1   :  { %v1209_v42 = vpop.f32.mrf.mxu0 }
 0x7a2   :  { %v1210_v39 = vadd.f32 %v1732_v37, %v1209_v42  ;;  %v1240_v46 = vmax.f32 %v1218_v41, 0.0 }
 0x7a3   :  { %v2140_v44 = vpop.f32.mrf.mxu0 }
 0x7a4   :  { %v1238_v47 = vmax.f32 %v1210_v39, 0.0  ;;  %v1231_v50 = vadd.f32 %v2140_v44, %v1732_v37  ;;  %v1246_v33 = vpack.c.bf16 %v1240_v46, %v1239_v49 }
 0x7a5   :  { %v1222_v48 = vpop.f32.mrf.mxu0 }
 0x7a6   :  { %v1245_v36 = vpack.c.bf16 %v1238_v47, %v1237_v45  ;;  %v1243_v53 = vmax.f32 %v1231_v50, 0.0  ;;  %v1223_v54 = vadd.f32 %v1732_v37, %v1222_v48 }
 0x7a7   :  { %v2141_v51 = vpop.f32.mrf.mxu0 }
 0x7a8   :  { %v1234_v29 = vadd.f32 %v2141_v51, %v1732_v37  ;;  %1607 = vmatprep.mubr.bf16.mxu0 %v1245_v36  ;;  %v1241_v60 = vmax.f32 %v1223_v54, 0.0 }
 0x7a9   :  { %v1225_v52 = vpop.f32.mrf.mxu0  ;;  %1608 = vmatmul.mubr.bf16.vlgmr.msra.gmra.mxu0 %v2508_v5  ;;  %v1889_v5 = vpop.f32.mrf.mxu1 }
 0x7aa   :  { %v1244_v55 = vmax.f32 %v1234_v29, 0.0  ;;  %v1226_v56 = vadd.f32 %v1732_v37, %v1225_v52  ;;  %1615 = vmatprep.mubr.bf16.mxu0 %v1246_v33 }
 0x7ab   :  { %v1890_v2 = vpop.f32.mrf.mxu1 }
 0x7ac   :  { %v1248_v57 = vpack.c.bf16 %v1244_v55, %v1243_v53  ;;  %v1242_v59 = vmax.f32 %v1226_v56, 0.0  ;;  %v1891_v18 = vadd.f32 %v1890_v2, %v1889_v5 }
 0x7ad   :  { %v1892_v4 = vpop.f32.mrf.mxu1 }
 0x7ae   :  { %1631 = vmatprep.mubr.bf16.mxu1 %v1248_v57  ;;  %v1247_v61 = vpack.c.bf16 %v1242_v59, %v1241_v60 }
 0x7af   :  { %1632 = vmatmul.mubr.bf16.vlgmr.msra.gmra.mxu1 %v2497_v58  ;;  %v1893_v6 = vpop.f32.mrf.mxu1 }
 0x7b0   :  { %v1894_v26 = vadd.f32 %v1893_v6, %v1892_v4 }
 0x7b1   :  { %1616 = vmatmul.mubr.bf16.gmra.mxu0 %v2504_v1  ;;  %v1895_v8 = vpop.f32.mrf.mxu1  ;;  %v1741_v1 = vld [vmem:[#allocation10 + $0x6] ss:$0 sm:$0xff] }
 0x7b2   :  { %1623 = vmatprep.mubr.bf16.mxu0 %v1247_v61  ;;  %v1545_v17 = vadd.f32 %v1888_v14, %v1741_v1  ;;  %v1548_v25 = vadd.f32 %v1891_v18, %v1741_v1  ;;  %v1553_v40 = vadd.f32 %v1894_v26, %v1741_v1 }
 0x7b3   :  { %v1896_v10 = vpop.f32.mrf.mxu1 }
 0x7b4   :  { %v1897_v41 = vadd.f32 %v1896_v10, %v1895_v8 }
 0x7b5   :  { %v1898_v3 = vpop.f32.mrf.mxu1 }
 0x7b6   :  { %v1556_v49 = vadd.f32 %v1897_v41, %v1741_v1 }
 0x7b7   :  { %v1899_v11 = vpop.f32.mrf.mxu1 }
 0x7b8   :  { %v1900_v36 = vadd.f32 %v1899_v11, %v1898_v3 }
 0x7b9   :  { %1624 = vmatmul.mubr.bf16.gmra.mxu0 %v2499_v62  ;;  %v1901_v7 = vpop.f32.mrf.mxu1 }
 0x7ba   :  { %v1561_v53 = vadd.f32 %v1900_v36, %v1741_v1 }
 0x7bb   :  { %v1902_v9 = vpop.f32.mrf.mxu1 }
 0x7bc   :  { %v1903_v54 = vadd.f32 %v1902_v9, %v1901_v7 }
 0x7bd   :  { %v1904_v12 = vpop.f32.mrf.mxu1 }
 0x7be   :  { %v1564_v60 = vadd.f32 %v1903_v54, %v1741_v1 }
 0x7bf   :  { %v1905_v58 = vpop.f32.mrf.mxu1 }
 0x7c0   :  { %v1906_v19 = vadd.f32 %v1905_v58, %v1904_v12 }
 0x7c1   :  { %v1907_v13 = vpop.f32.mrf.mxu1 }
 0x7c2   :  { %v1569_v27 = vadd.f32 %v1906_v19, %v1741_v1 }
 0x7c3   :  { %v1908_v62 = vpop.f32.mrf.mxu1 }
 0x7c4   :  { %v1909_v32 = vadd.f32 %v1908_v62, %v1907_v13 }
 0x7c6   :  { %v1572_v45 = vadd.f32 %v1909_v32, %v1741_v1 }
 0x869   :  { %v1926_v15 = vpop.f32.mrf.mxu0 }
 0x86b   :  { %v1927_v16 = vpop.f32.mrf.mxu0 }
 0x86c   :  { %v1928_v20 = vadd.f32 %v1927_v16, %v1926_v15 }
 0x86d   :  { %v1929_v21 = vpop.f32.mrf.mxu0 }
 0x86e   :  { %v1610_v22 = vadd.f32 %v1928_v20, %v1545_v17 }
 0x86f   :  { %v1930_v23 = vpop.f32.mrf.mxu0  ;;  %v1944_v24 = vpop.f32.mrf.mxu1 }
 0x870   :  { %1640 = vst [vmem:[#allocation11] sm:$0xff] %v1610_v22  ;;  %v1931_v28 = vadd.f32 %v1930_v23, %v1929_v21 }
 0x871   :  { %v1932_v30 = vpop.f32.mrf.mxu0  ;;  %v1945_v31 = vpop.f32.mrf.mxu1 }
 0x872   :  { %v1613_v34 = vadd.f32 %v1931_v28, %v1548_v25  ;;  %v1946_v35 = vadd.f32 %v1945_v31, %v1944_v24 }
 0x873   :  { %v1933_v37 = vpop.f32.mrf.mxu0  ;;  %v1947_v38 = vpop.f32.mrf.mxu1 }
 0x874   :  { %1641 = vst [vmem:[#allocation11 + $0x8] sm:$0xff] %v1613_v34  ;;  %v1634_v42 = vadd.f32 %v1946_v35, %v1569_v27  ;;  %v1934_v43 = vadd.f32 %v1933_v37, %v1932_v30 }
 0x875   :  { %v1935_v39 = vpop.f32.mrf.mxu0  ;;  %v1948_v44 = vpop.f32.mrf.mxu1 }
 0x876   :  { %1646 = vst [vmem:[#allocation11 + $0x30] sm:$0xff] %v1634_v42  ;;  %v1618_v46 = vadd.f32 %v1934_v43, %v1553_v40  ;;  %v1949_v47 = vadd.f32 %v1948_v44, %v1947_v38 }
 0x877   :  { %v1936_v48 = vpop.f32.mrf.mxu0 }
 0x878   :  { %1642 = vst [vmem:[#allocation11 + $0x10] sm:$0xff] %v1618_v46  ;;  %v1637_v50 = vadd.f32 %v1949_v47, %v1572_v45  ;;  %v1937_v51 = vadd.f32 %v1936_v48, %v1935_v39 }
 0x879   :  { %v1938_v33 = vpop.f32.mrf.mxu0 }
 0x87a   :  { %1647 = vst [vmem:[#allocation11 + $0x38] sm:$0xff] %v1637_v50  ;;  %v1621_v29 = vadd.f32 %v1937_v51, %v1556_v49 }
 0x87b   :  { %v1939_v52 = vpop.f32.mrf.mxu0 }
 0x87c   :  { %1643 = vst [vmem:[#allocation11 + $0x18] sm:$0xff] %v1621_v29  ;;  %v1940_v55 = vadd.f32 %v1939_v52, %v1938_v33 }
 0x87d   :  { %v1941_v56 = vpop.f32.mrf.mxu0 }
 0x87e   :  { %v1626_v57 = vadd.f32 %v1940_v55, %v1561_v53 }
 0x87f   :  { %v1942_v59 = vpop.f32.mrf.mxu0 }
 0x880   :  { %1644 = vst [vmem:[#allocation11 + $0x20] sm:$0xff] %v1626_v57  ;;  %v1943_v61 = vadd.f32 %v1942_v59, %v1941_v56 }
 0x882   :  { %v1629_v63 = vadd.f32 %v1943_v61, %v1564_v60 }
 0x884   :  { %1645 = vst [vmem:[#allocation11 + $0x28] sm:$0xff] %v1629_v63 }
 0x885   :  { %2371 = shalt.err (!%p2368_p1)
}
 0x886   :  { %s2396_s18 = smov 128   ;;  %s2397_s19 = smov 8  }
 0x887   :  { %1659 = dma.vmem_to_hbm [thread:$0]  %s1654_s4, 1024, %s2535_s5, [#allocation4], %s2396_s18, %s2396_s18, %s2397_s19  }
 0x888   :  { %2386 = dma.done.wait [#allocation4], 1024  }
 0x889   :  { %2387 = vsyncadd [#allocation4], 4294966272 }
 0x88a   :  { %1663 = vsyncpa [#allocation3], 1 }
 0x88b   :  { %1664 = vsyncpa [#allocation6], 1 }
 0x88c   :  { %1665 = vsyncpa [#allocation9], 1 }
 0x88d   :  { %1666 = vsyncpa [#allocation4], 1 }

</bundles_post_ra>
